<compile_context>
chip_gen: v7x
topology: tpu7x:2x2x1
jax: 0.10.0
libtpu: 0.0.40
codegen_flags: <defaults>
</compile_context>

<pallas_src>
import functools

import jax
import jax.numpy as jnp
from jax.experimental import pallas as pl
from jax.experimental.pallas import tpu as pltpu

LN_EPS = 1e-5       # PyTorch nn.LayerNorm default
LANE = 128          # TPU lane width
TB_MAX = 2048       # max batch-tile rows (fits v7x 64 MiB VMEM with margin)


def _round_up(x, m):
    return (x + m - 1) // m * m


def _actor_kernel(x_ref, w1_ref, w2_ref, w3_ref, vec_ref, o_ref, *,
                  h1_true, h2_true):
    """Fused Linear->LN->ReLU, Linear->LN->ReLU, Linear->tanh on one batch tile.

    Hidden/output dims are lane-padded; LayerNorm uses the two-moment form
    with the TRUE feature count as denominator, which is exact because padded
    lanes of the linear outputs are identically zero (zero-pad weights/bias)
    and padded gamma/beta lanes are zero (so pad lanes stay zero afterwards).
    """
    cdt = w1_ref.dtype            # matmul compute dtype (bf16)
    h1p = w1_ref.shape[1]         # 512  (padded 400)
    h2p = w2_ref.shape[1]         # 384  (padded 300)
    nap = w3_ref.shape[1]         # 128  (padded num_actions)

    x = x_ref[...]                # already bf16 (pre-cast in wrapper)
    vec = vec_ref[...]            # (8, 512) f32 packed bias/LN slab

    b1, g1, be1 = vec[0:1, :h1p], vec[1:2, :h1p], vec[2:3, :h1p]
    b2, g2, be2 = vec[3:4, :h2p], vec[4:5, :h2p], vec[5:6, :h2p]
    b3 = vec[6:7, :nap]

    def layer_norm(h, g, b, true_dim):
        inv_n = jnp.float32(1.0 / true_dim)
        mu = jnp.sum(h, axis=-1, keepdims=True) * inv_n
        ex2 = jnp.sum(h * h, axis=-1, keepdims=True) * inv_n
        var = jnp.maximum(ex2 - mu * mu, 0.0)          # biased var, exact w/ zero pad
        return (h - mu) * jax.lax.rsqrt(var + LN_EPS) * g + b

    # ---- layer 1: Linear(num_obs, 400) -> LayerNorm(400) -> ReLU ----
    h = jnp.dot(x, w1_ref[...], preferred_element_type=jnp.float32) + b1
    h = jnp.maximum(layer_norm(h, g1, be1, h1_true), 0.0)

    # ---- layer 2: Linear(400, 300) -> LayerNorm(300) -> ReLU ----
    h = jnp.dot(h.astype(cdt), w2_ref[...], preferred_element_type=jnp.float32) + b2
    h = jnp.maximum(layer_norm(h, g2, be2, h2_true), 0.0)

    # ---- layer 3: Linear(300, num_actions) -> tanh ----
    h = jnp.dot(h.astype(cdt), w3_ref[...], preferred_element_type=jnp.float32) + b3
    o_ref[...] = jnp.tanh(h).astype(o_ref.dtype)


def prepare_params(params, compute_dtype=jnp.bfloat16):
    """One-time layout work: transpose PyTorch (out,in) weights to (in,out),
    zero-pad hidden/output dims to lane multiples, cast matmul operands to
    bf16, and pack all 1-D params into one (8, 512) f32 slab.

    Returns (prepped_arrays, dims) where dims = (num_obs, h1, h2, na) are the
    TRUE (unpadded) sizes, needed as static constants by the kernel/wrapper.
    """
    h1, num_obs = params["w1"].shape
    h2 = params["w2"].shape[0]
    na = params["w3"].shape[0]
    h1p, h2p, nap = _round_up(h1, LANE), _round_up(h2, LANE), _round_up(na, LANE)
    vecw = max(h1p, h2p, nap)

    w1 = jnp.zeros((num_obs, h1p), compute_dtype)
    w1 = w1.at[:, :h1].set(params["w1"].T.astype(compute_dtype))
    w2 = jnp.zeros((h1p, h2p), compute_dtype)
    w2 = w2.at[:h1, :h2].set(params["w2"].T.astype(compute_dtype))
    w3 = jnp.zeros((h2p, nap), compute_dtype)
    w3 = w3.at[:h2, :na].set(params["w3"].T.astype(compute_dtype))

    slab = jnp.zeros((8, vecw), jnp.float32)
    slab = slab.at[0, :h1].set(params["b1"].astype(jnp.float32))
    slab = slab.at[1, :h1].set(params["g1"].astype(jnp.float32))   # pad gamma = 0
    slab = slab.at[2, :h1].set(params["be1"].astype(jnp.float32))  # pad beta  = 0
    slab = slab.at[3, :h2].set(params["b2"].astype(jnp.float32))
    slab = slab.at[4, :h2].set(params["g2"].astype(jnp.float32))
    slab = slab.at[5, :h2].set(params["be2"].astype(jnp.float32))
    slab = slab.at[6, :na].set(params["b3"].astype(jnp.float32))

    prepped = {"w1": w1, "w2": w2, "w3": w3, "vec": slab}
    dims = (num_obs, h1, h2, na)
    return prepped, dims


def actor_forward(state, prepped, dims, *, tb_max=TB_MAX):
    """state: (B, num_obs) f32. prepped/dims: output of prepare_params()."""
    num_obs, h1, h2, na = dims
    B = state.shape[0]
    w1, w2, w3, vec = prepped["w1"], prepped["w2"], prepped["w3"], prepped["vec"]
    h1p, h2p, nap = w1.shape[1], w2.shape[1], w3.shape[1]

    # Batch tiling: sublane-align to 8; for B > 64 ensure >= 2 grid steps so
    # v7x's 2 TensorCores each take a share (no-op on 1-TC v5e/v6e).
    bp8 = _round_up(B, 8)
    if B <= 64:
        tb = bp8
    else:
        tb = min(tb_max, _round_up(pl.cdiv(bp8, 2), 8))
    bp = _round_up(bp8, tb)

    x = state.astype(jnp.bfloat16)          # pre-cast: halves input DMA bytes
    if bp != B:
        x = jnp.pad(x, ((0, bp - B), (0, 0)))

    wbytes = jnp.dtype(w1.dtype).itemsize
    cost = pl.CostEstimate(
        flops=2 * B * (num_obs * h1 + h1 * h2 + h2 * na),
        transcendentals=B * (2 + na),       # 2 rsqrt + na tanh per row
        bytes_accessed=(w1.size + w2.size + w3.size) * wbytes
        + vec.size * 4 + bp * num_obs * 2 + bp * nap * 4,
    )

    kernel = functools.partial(_actor_kernel, h1_true=h1, h2_true=h2)

    out = pl.pallas_call(
        kernel,
        out_shape=jax.ShapeDtypeStruct((bp, nap), state.dtype),
        grid=(bp // tb,),
        in_specs=[
            pl.BlockSpec((tb, num_obs), lambda i: (i, 0)),   # streamed batch tile
            pl.BlockSpec((num_obs, h1p), lambda i: (0, 0)),  # resident weights
            pl.BlockSpec((h1p, h2p), lambda i: (0, 0)),
            pl.BlockSpec((h2p, nap), lambda i: (0, 0)),
            pl.BlockSpec(vec.shape, lambda i: (0, 0)),       # packed bias/LN slab
        ],
        out_specs=pl.BlockSpec((tb, nap), lambda i: (i, 0)), # lane-dense (128-wide)
        compiler_params=pltpu.CompilerParams(
            dimension_semantics=("parallel",),               # v7x: 2 TCs split batch
            vmem_limit_bytes=40 * 1024 * 1024,               # ~footprint, < v7x 64 MiB
        ),
        cost_estimate=cost,
    )(x, w1, w2, w3, vec)

    return out[:B, :na]


def init_params(key, num_obs, num_actions):
    """Deterministic init mirroring ActorNetwork.initialize_weights()."""
    k = jax.random.split(key, 8)
    h1, h2 = 400, 300
    r1 = 1.0 / jnp.sqrt(jnp.float32(h1))
    r2 = 1.0 / jnp.sqrt(jnp.float32(h2))
    u = lambda kk, shape, r: jax.random.uniform(kk, shape, jnp.float32, -r, r)
    return {
        "w1": u(k[0], (h1, num_obs), r1),
        "b1": u(k[1], (h1,), r1),
        "w2": u(k[2], (h2, h1), r2),
        "b2": u(k[3], (h2,), r2),
        "w3": u(k[4], (num_actions, h2), 0.003),
        "b3": u(k[5], (num_actions,), 0.003),
        # LayerNorm affine params: PyTorch defaults (weight=1, bias=0)
        "g1": jnp.ones((h1,), jnp.float32),
        "be1": jnp.zeros((h1,), jnp.float32),
        "g2": jnp.ones((h2,), jnp.float32),
        "be2": jnp.zeros((h2,), jnp.float32),
    }


def _reference_forward(state, params):
    """Pure-JAX f32 reference of the PyTorch forward."""
    def ln(x, g, b):
        mu = jnp.mean(x, axis=-1, keepdims=True)
        var = jnp.mean((x - mu) ** 2, axis=-1, keepdims=True)
        return (x - mu) / jnp.sqrt(var + LN_EPS) * g + b

    x = state @ params["w1"].T + params["b1"]
    x = jax.nn.relu(ln(x, params["g1"], params["be1"]))
    x = x @ params["w2"].T + params["b2"]
    x = jax.nn.relu(ln(x, params["g2"], params["be2"]))
    x = x @ params["w3"].T + params["b3"]
    return jnp.tanh(x)


if __name__ == "__main__":
    num_obs, num_actions = 32, 8
    key = jax.random.PRNGKey(0)
    k_param, k_state = jax.random.split(key)

    params = init_params(k_param, num_obs, num_actions)
    prepped, dims = prepare_params(params)          # one-time layout / cast work

    fwd = jax.jit(actor_forward, static_argnames=("dims",))

    # Small single-step case and a multi-step (grid=2) case.
    for batch in (2, 96):
        k_b = jax.random.fold_in(k_state, batch)
        state = jax.random.normal(k_b, (batch, num_obs), jnp.float32)

        out = jax.block_until_ready(fwd(state, prepped, dims=dims))
        ref = _reference_forward(state, params)

        assert out.shape == (batch, num_actions), out.shape
        # bf16 MXU operands with f32 accumulation -> compare at bf16 tolerance.
        assert jnp.allclose(out, ref, atol=2e-2, rtol=2e-2), (
            f"B={batch}: max abs err {float(jnp.max(jnp.abs(out - ref)))}")

    print("KERNEL_OK")
</pallas_src>

<mosaic_0001>
module attributes {stable_mosaic.version = 11 : i64} {
  func.func @_actor_kernel(%arg0: i32, %arg1: memref<8x32xbf16, #tpu.memory_space<vmem>>, %arg2: memref<32x512xbf16, #tpu.memory_space<vmem>>, %arg3: memref<512x384xbf16, #tpu.memory_space<vmem>>, %arg4: memref<384x128xbf16, #tpu.memory_space<vmem>>, %arg5: memref<8x512xf32, #tpu.memory_space<vmem>>, %arg6: memref<8x128xf32, #tpu.memory_space<vmem>>) attributes {dimension_semantics = [#tpu.dimension_semantics<parallel>], iteration_bounds = array<i64: 1>, scalar_prefetch = 0 : i64, scratch_operands = 0 : i64, tpu.core_type = #tpu.core_type<tc>, window_params = [{transform_indices = @transform_0, window_bounds = array<i64: 8, 32>}, {pipeline_mode = #tpu.pipeline_mode<synchronous>, transform_indices = @transform_1, window_bounds = array<i64: 32, 512>}, {pipeline_mode = #tpu.pipeline_mode<synchronous>, transform_indices = @transform_2, window_bounds = array<i64: 512, 384>}, {pipeline_mode = #tpu.pipeline_mode<synchronous>, transform_indices = @transform_3, window_bounds = array<i64: 384, 128>}, {pipeline_mode = #tpu.pipeline_mode<synchronous>, transform_indices = @transform_4, window_bounds = array<i64: 8, 512>}, {transform_indices = @transform_5, window_bounds = array<i64: 8, 128>}]} {
    %c0 = arith.constant 0 : index
    %c0_0 = arith.constant 0 : index
    %0 = vector.load %arg1[%c0, %c0_0] : memref<8x32xbf16, #tpu.memory_space<vmem>>, vector<8x32xbf16>
    %c0_1 = arith.constant 0 : index
    %c0_2 = arith.constant 0 : index
    %1 = vector.load %arg5[%c0_1, %c0_2] : memref<8x512xf32, #tpu.memory_space<vmem>>, vector<8x512xf32>
    %2 = vector.extract_strided_slice %1 {offsets = [0, 0], sizes = [1, 512], strides = [1, 1]} : vector<8x512xf32> to vector<1x512xf32>
    %3 = vector.extract_strided_slice %1 {offsets = [1, 0], sizes = [1, 512], strides = [1, 1]} : vector<8x512xf32> to vector<1x512xf32>
    %4 = vector.extract_strided_slice %1 {offsets = [2, 0], sizes = [1, 512], strides = [1, 1]} : vector<8x512xf32> to vector<1x512xf32>
    %5 = vector.extract_strided_slice %1 {offsets = [3, 0], sizes = [1, 384], strides = [1, 1]} : vector<8x512xf32> to vector<1x384xf32>
    %6 = vector.extract_strided_slice %1 {offsets = [4, 0], sizes = [1, 384], strides = [1, 1]} : vector<8x512xf32> to vector<1x384xf32>
    %7 = vector.extract_strided_slice %1 {offsets = [5, 0], sizes = [1, 384], strides = [1, 1]} : vector<8x512xf32> to vector<1x384xf32>
    %8 = vector.extract_strided_slice %1 {offsets = [6, 0], sizes = [1, 128], strides = [1, 1]} : vector<8x512xf32> to vector<1x128xf32>
    %c0_3 = arith.constant 0 : index
    %c0_4 = arith.constant 0 : index
    %9 = vector.load %arg2[%c0_3, %c0_4] : memref<32x512xbf16, #tpu.memory_space<vmem>>, vector<32x512xbf16>
    %cst = arith.constant dense<0.000000e+00> : vector<8x512xf32>
    %10 = tpu.matmul %0, %9, %cst {dimension_numbers = #tpu.dot_dimension_numbers<[1], [0], [0], [1], [0, 0, 1, 1], [], []>} : vector<8x32xbf16>, vector<32x512xbf16>, vector<8x512xf32> -> vector<8x512xf32>
    %11 = vector.broadcast %2 : vector<1x512xf32> to vector<8x512xf32>
    %12 = arith.addf %10, %11 : vector<8x512xf32>
    %cst_5 = arith.constant dense<0.000000e+00> : vector<8xf32>
    %13 = vector.multi_reduction <add>, %12, %cst_5 [1] : vector<8x512xf32> to vector<8xf32>
    %14 = vector.shape_cast %13 : vector<8xf32> to vector<8x1xf32>
    %cst_6 = arith.constant 2.500000e-03 : f32
    %15 = vector.broadcast %cst_6 : f32 to vector<8x1xf32>
    %16 = arith.mulf %14, %15 : vector<8x1xf32>
    %17 = arith.mulf %12, %12 : vector<8x512xf32>
    %cst_7 = arith.constant dense<0.000000e+00> : vector<8xf32>
    %18 = vector.multi_reduction <add>, %17, %cst_7 [1] : vector<8x512xf32> to vector<8xf32>
    %19 = vector.shape_cast %18 : vector<8xf32> to vector<8x1xf32>
    %cst_8 = arith.constant 2.500000e-03 : f32
    %20 = vector.broadcast %cst_8 : f32 to vector<8x1xf32>
    %21 = arith.mulf %19, %20 : vector<8x1xf32>
    %22 = arith.mulf %16, %16 : vector<8x1xf32>
    %23 = arith.subf %21, %22 : vector<8x1xf32>
    %cst_9 = arith.constant 0.000000e+00 : f32
    %24 = vector.broadcast %cst_9 : f32 to vector<8x1xf32>
    %25 = arith.maximumf %23, %24 : vector<8x1xf32>
    %26 = vector.broadcast %16 : vector<8x1xf32> to vector<8x512xf32>
    %27 = arith.subf %12, %26 : vector<8x512xf32>
    %cst_10 = arith.constant 9.99999974E-6 : f32
    %28 = vector.broadcast %cst_10 : f32 to vector<8x1xf32>
    %29 = arith.addf %25, %28 : vector<8x1xf32>
    %30 = math.rsqrt %29 : vector<8x1xf32>
    %31 = vector.broadcast %30 : vector<8x1xf32> to vector<8x512xf32>
    %32 = arith.mulf %27, %31 : vector<8x512xf32>
    %33 = vector.broadcast %3 : vector<1x512xf32> to vector<8x512xf32>
    %34 = arith.mulf %32, %33 : vector<8x512xf32>
    %35 = vector.broadcast %4 : vector<1x512xf32> to vector<8x512xf32>
    %36 = arith.addf %34, %35 : vector<8x512xf32>
    %cst_11 = arith.constant 0.000000e+00 : f32
    %37 = vector.broadcast %cst_11 : f32 to vector<8x512xf32>
    %38 = arith.maximumf %36, %37 : vector<8x512xf32>
    %39 = arith.truncf %38 : vector<8x512xf32> to vector<8x512xbf16>
    %c0_12 = arith.constant 0 : index
    %c0_13 = arith.constant 0 : index
    %40 = vector.load %arg3[%c0_12, %c0_13] : memref<512x384xbf16, #tpu.memory_space<vmem>>, vector<512x384xbf16>
    %cst_14 = arith.constant dense<0.000000e+00> : vector<8x384xf32>
    %41 = tpu.matmul %39, %40, %cst_14 {dimension_numbers = #tpu.dot_dimension_numbers<[1], [0], [0], [1], [0, 0, 1, 1], [], []>} : vector<8x512xbf16>, vector<512x384xbf16>, vector<8x384xf32> -> vector<8x384xf32>
    %42 = vector.broadcast %5 : vector<1x384xf32> to vector<8x384xf32>
    %43 = arith.addf %41, %42 : vector<8x384xf32>
    %cst_15 = arith.constant dense<0.000000e+00> : vector<8xf32>
    %44 = vector.multi_reduction <add>, %43, %cst_15 [1] : vector<8x384xf32> to vector<8xf32>
    %45 = vector.shape_cast %44 : vector<8xf32> to vector<8x1xf32>
    %cst_16 = arith.constant 0.00333333341 : f32
    %46 = vector.broadcast %cst_16 : f32 to vector<8x1xf32>
    %47 = arith.mulf %45, %46 : vector<8x1xf32>
    %48 = arith.mulf %43, %43 : vector<8x384xf32>
    %cst_17 = arith.constant dense<0.000000e+00> : vector<8xf32>
    %49 = vector.multi_reduction <add>, %48, %cst_17 [1] : vector<8x384xf32> to vector<8xf32>
    %50 = vector.shape_cast %49 : vector<8xf32> to vector<8x1xf32>
    %cst_18 = arith.constant 0.00333333341 : f32
    %51 = vector.broadcast %cst_18 : f32 to vector<8x1xf32>
    %52 = arith.mulf %50, %51 : vector<8x1xf32>
    %53 = arith.mulf %47, %47 : vector<8x1xf32>
    %54 = arith.subf %52, %53 : vector<8x1xf32>
    %cst_19 = arith.constant 0.000000e+00 : f32
    %55 = vector.broadcast %cst_19 : f32 to vector<8x1xf32>
    %56 = arith.maximumf %54, %55 : vector<8x1xf32>
    %57 = vector.broadcast %47 : vector<8x1xf32> to vector<8x384xf32>
    %58 = arith.subf %43, %57 : vector<8x384xf32>
    %cst_20 = arith.constant 9.99999974E-6 : f32
    %59 = vector.broadcast %cst_20 : f32 to vector<8x1xf32>
    %60 = arith.addf %56, %59 : vector<8x1xf32>
    %61 = math.rsqrt %60 : vector<8x1xf32>
    %62 = vector.broadcast %61 : vector<8x1xf32> to vector<8x384xf32>
    %63 = arith.mulf %58, %62 : vector<8x384xf32>
    %64 = vector.broadcast %6 : vector<1x384xf32> to vector<8x384xf32>
    %65 = arith.mulf %63, %64 : vector<8x384xf32>
    %66 = vector.broadcast %7 : vector<1x384xf32> to vector<8x384xf32>
    %67 = arith.addf %65, %66 : vector<8x384xf32>
    %cst_21 = arith.constant 0.000000e+00 : f32
    %68 = vector.broadcast %cst_21 : f32 to vector<8x384xf32>
    %69 = arith.maximumf %67, %68 : vector<8x384xf32>
    %70 = arith.truncf %69 : vector<8x384xf32> to vector<8x384xbf16>
    %c0_22 = arith.constant 0 : index
    %c0_23 = arith.constant 0 : index
    %71 = vector.load %arg4[%c0_22, %c0_23] : memref<384x128xbf16, #tpu.memory_space<vmem>>, vector<384x128xbf16>
    %cst_24 = arith.constant dense<0.000000e+00> : vector<8x128xf32>
    %72 = tpu.matmul %70, %71, %cst_24 {dimension_numbers = #tpu.dot_dimension_numbers<[1], [0], [0], [1], [0, 0, 1, 1], [], []>} : vector<8x384xbf16>, vector<384x128xbf16>, vector<8x128xf32> -> vector<8x128xf32>
    %73 = vector.broadcast %8 : vector<1x128xf32> to vector<8x128xf32>
    %74 = arith.addf %72, %73 : vector<8x128xf32>
    %75 = math.tanh %74 : vector<8x128xf32>
    %c0_25 = arith.constant 0 : index
    %c0_26 = arith.constant 0 : index
    %76 = vector.load %arg6[%c0_25, %c0_26] : memref<8x128xf32, #tpu.memory_space<vmem>>, vector<8x128xf32>
    tpu.vector_store %arg6[%c0_25, %c0_26], %75 {strides = array<i32>} : memref<8x128xf32, #tpu.memory_space<vmem>>, vector<8x128xf32>,
    return
  }
  func.func @transform_0(%arg0: i32) -> (i32, i32) {
    %c0_i32 = arith.constant 0 : i32
    %c0_i32_0 = arith.constant 0 : i32
    return %arg0, %c0_i32 : i32, i32
  }
  func.func @transform_1(%arg0: i32) -> (i32, i32) {
    %c0_i32 = arith.constant 0 : i32
    %c0_i32_0 = arith.constant 0 : i32
    %c0_i32_1 = arith.constant 0 : i32
    return %c0_i32, %c0_i32_0 : i32, i32
  }
  func.func @transform_2(%arg0: i32) -> (i32, i32) {
    %c0_i32 = arith.constant 0 : i32
    %c0_i32_0 = arith.constant 0 : i32
    %c0_i32_1 = arith.constant 0 : i32
    return %c0_i32, %c0_i32_0 : i32, i32
  }
  func.func @transform_3(%arg0: i32) -> (i32, i32) {
    %c0_i32 = arith.constant 0 : i32
    %c0_i32_0 = arith.constant 0 : i32
    %c0_i32_1 = arith.constant 0 : i32
    return %c0_i32, %c0_i32_0 : i32, i32
  }
  func.func @transform_4(%arg0: i32) -> (i32, i32) {
    %c0_i32 = arith.constant 0 : i32
    %c0_i32_0 = arith.constant 0 : i32
    %c0_i32_1 = arith.constant 0 : i32
    return %c0_i32, %c0_i32_0 : i32, i32
  }
  func.func @transform_5(%arg0: i32) -> (i32, i32) {
    %c0_i32 = arith.constant 0 : i32
    %c0_i32_0 = arith.constant 0 : i32
    return %arg0, %c0_i32 : i32, i32
  }
}

</mosaic_0001>

<bundles_post_ra>
// kernel: actor_forward.1
= control target key start
LH: loop header
LB: loop body
LE: loop exit
PB: predicated region body
PF: predicated region fallthrough
CT: control target
= control target key end

     0   :  { %10 = vsyncpa [#allocation3], 0  ;;  %s2171_s0 = inlined_call_operand.vmem [shape: bf16[8,32], index: 0, kind: input, shape index: {}]   ;;  %s2172_s1 = inlined_call_operand.hbm [shape: bf16[32,512], index: 1, kind: input, shape index: {}]   ;;  %s2173_s2 = inlined_call_operand.hbm [shape: bf16[512,384], index: 2, kind: input, shape index: {}]   ;;  %s2174_s3 = inlined_call_operand.hbm [shape: bf16[384,128], index: 3, kind: input, shape index: {}]   ;;  %s2175_s4 = inlined_call_operand.hbm [shape: f32[8,512], index: 4, kind: input, shape index: {}]   ;;  %s2176_s5 = inlined_call_operand.vmem [shape: f32[8,128], index: 5, kind: output, shape index: {}]  }
   0x1   :  { %11 = vsyncpa [#allocation5], 0 }
   0x2   :  { %12 = vsyncpa [#allocation8], 0  ;;  %s1973_s18 = smov [#allocation4]   ;;  %s1879_s22 = scalar_lea.hbm %s2173_s2, 12288 }
   0x3   :  { %s32_s19 = sshll.u32 %s1973_s18, 4  ;;  %p1880_p0 = scmp.ne.s32.totalorder %s2173_s2, %s1879_s22  ;;  %s33_s19 = int_to_ptr.vmem [resolvable:$true] %s32_s19 }
   0x4   :  { %p1883_p1 = scmp.lt.u32.totalorder %s1879_s22, %s2173_s2 }
   0x6   :  { %p1885_p2 = pnand %p1883_p1, %p1880_p0 }
   0x8   :  { %1888 = shalt.err (!%p1885_p2)
}
   0x9   :  { %s1889_s27 = scalar_lea.vmem %s33_s19, 12288  ;;  %p1894_p4 = scmp.lt.s32.totalorder %s33_s19, %s33_s19 }
   0xa   :  { %p1890_p3 = scmp.ne.s32.totalorder %s33_s19, %s1889_s27  ;;  %p1895_p5 = scmp.lt.s32.totalorder %s1889_s27, %s1889_s27 }
   0xc   :  { %p1896_p6 = por %p1895_p5, %p1894_p4 }
   0xe   :  { %p1897_p7 = pnand %p1896_p6, %p1890_p3 }
  0x10   :  { %1900 = shalt.err (!%p1897_p7)
}
  0x11   :  { %s1974_s28 = smov 192   ;;  %s1975_s29 = smov 12  }
  0x12   :  { %38 = dma.hbm_to_vmem [thread:$0]  %s2173_s2, 12288, %s33_s19, [#allocation5], %s1974_s28, %s1974_s28, %s1975_s29  }
  0x13   :  { %s1976_s7 = smov [#allocation2]   ;;  %s1901_s11 = scalar_lea.hbm %s2172_s1, 1024 }
  0x14   :  { %s20_s8 = sshll.u32 %s1976_s7, 4  ;;  %p1902_p8 = scmp.ne.s32.totalorder %s2172_s1, %s1901_s11  ;;  %s21_s8 = int_to_ptr.vmem [resolvable:$true] %s20_s8 }
  0x15   :  { %p1905_p9 = scmp.lt.u32.totalorder %s1901_s11, %s2172_s1 }
  0x17   :  { %p1907_p10 = pnand %p1905_p9, %p1902_p8 }
  0x19   :  { %1910 = shalt.err (!%p1907_p10)
}
  0x1a   :  { %s1911_s16 = scalar_lea.vmem %s21_s8, 1024  ;;  %p1916_p12 = scmp.lt.s32.totalorder %s21_s8, %s21_s8 }
  0x1b   :  { %p1912_p11 = scmp.ne.s32.totalorder %s21_s8, %s1911_s16  ;;  %p1917_p13 = scmp.lt.s32.totalorder %s1911_s16, %s1911_s16 }
  0x1d   :  { %p1918_p0 = por %p1917_p13, %p1916_p12 }
  0x1f   :  { %p1919_p1 = pnand %p1918_p0, %p1912_p11 }
  0x21   :  { %1922 = shalt.err (!%p1919_p1)
}
  0x22   :  { %s1977_s2 = smov 256   ;;  %s1978_s17 = smov 16  }
  0x23   :  { %26 = dma.hbm_to_vmem [thread:$0]  %s2172_s1, 1024, %s21_s8, [#allocation3], %s1977_s2, %s1977_s2, %s1978_s17  }
  0x24   :  { %s1979_s20 = smov [#allocation6]   ;;  %s1923_s24 = scalar_lea.hbm %s2174_s3, 3072 }
  0x25   :  { %s44_s21 = sshll.u32 %s1979_s20, 4  ;;  %p1924_p2 = scmp.ne.s32.totalorder %s2174_s3, %s1923_s24  ;;  %s45_s21 = int_to_ptr.vmem [resolvable:$true] %s44_s21 }
  0x26   :  { %p1927_p3 = scmp.lt.u32.totalorder %s1923_s24, %s2174_s3 }
  0x28   :  { %p1929_p4 = pnand %p1927_p3, %p1924_p2 }
  0x2a   :  { %1932 = shalt.err (!%p1929_p4)
}
  0x2b   :  { %s1933_s29 = scalar_lea.vmem %s45_s21, 3072  ;;  %p1938_p6 = scmp.lt.s32.totalorder %s45_s21, %s45_s21 }
  0x2c   :  { %p1934_p5 = scmp.ne.s32.totalorder %s45_s21, %s1933_s29  ;;  %p1939_p7 = scmp.lt.s32.totalorder %s1933_s29, %s1933_s29 }
  0x2e   :  { %p1940_p8 = por %p1939_p7, %p1938_p6 }
  0x30   :  { %p1941_p9 = pnand %p1940_p8, %p1934_p5 }
  0x32   :  { %1944 = shalt.err (!%p1941_p9)
}
  0x33   :  { %s1980_s1 = smov 64   ;;  %s1981_s30 = smov 4  }
  0x34   :  { %50 = dma.hbm_to_vmem [thread:$0]  %s2174_s3, 3072, %s45_s21, [#allocation5], %s1980_s1, %s1980_s1, %s1981_s30  }
  0x35   :  { %s1982_s8 = smov [#allocation7]   ;;  %s1945_s12 = scalar_lea.hbm %s2175_s4, 512 }
  0x36   :  { %s57_s9 = sshll.u32 %s1982_s8, 4  ;;  %p1946_p10 = scmp.ne.s32.totalorder %s2175_s4, %s1945_s12  ;;  %s58_s9 = int_to_ptr.vmem [resolvable:$true] %s57_s9 }
  0x37   :  { %p1949_p11 = scmp.lt.u32.totalorder %s1945_s12, %s2175_s4 }
  0x39   :  { %p1951_p12 = pnand %p1949_p11, %p1946_p10 }
  0x3b   :  { %1954 = shalt.err (!%p1951_p12)
}
  0x3c   :  { %s1955_s2 = scalar_lea.vmem %s58_s9, 512  ;;  %p1960_p0 = scmp.lt.s32.totalorder %s58_s9, %s58_s9 }
  0x3d   :  { %p1956_p13 = scmp.ne.s32.totalorder %s58_s9, %s1955_s2  ;;  %p1961_p1 = scmp.lt.s32.totalorder %s1955_s2, %s1955_s2 }
  0x3f   :  { %p1962_p2 = por %p1961_p1, %p1960_p0 }
  0x41   :  { %p1963_p3 = pnand %p1962_p2, %p1956_p13 }
  0x43   :  { %1966 = shalt.err (!%p1963_p3)
}
  0x44   :  { %60 = dma.hbm_to_vmem [thread:$0]  %s2175_s4, 512, %s58_s9, [#allocation8]  }
  0x45   :  { %1967 = dma.done.wait [#allocation3], 1024  }
  0x46   :  { %1968 = vsyncadd [#allocation3], 4294966272 }
  0x47   :  { %1969 = dma.done.wait [#allocation5], 15360  }
  0x48   :  { %1970 = vsyncadd [#allocation5], 4294951936 }
  0x49   :  { %1971 = dma.done.wait [#allocation8], 512  }
  0x4a   :  { %1972 = vsyncadd [#allocation8], 4294966784  ;;  %v1983_v0 = vmov 0   ;;  %v1709_v1 = vld [vmem:[#allocation2 + $0x4] ss:$16 sps:$4 sm:$0xff]   ;;  %vm143_vm0 = vcmask 261120   ;;  %v87_v26 = vlaneseq }
  0x4b   :  { %179 = vmatprep.mubr.bf16.mxu0 %v1983_v0  ;;  %220 = vmatprep.mubr.bf16.mxu1 %v1983_v0  ;;  %v1711_v2 = vld [vmem:[#allocation2 + $0xc] ss:$16 sps:$4 sm:$0xff]   ;;  %v1713_v3 = vld [vmem:[#allocation2] ss:$16 sps:$4 sm:$0xff]   ;;  %v1714_v4 = vld [vmem:[#allocation2 + $0x8] ss:$16 sps:$4 sm:$0xff]  }
  0x4c   :  { %147 = vmatprep.subr.bf16.mxu0 %v1709_v1  ;;  %188 = vmatprep.subr.bf16.mxu1 %v1711_v2  ;;  %v1715_v5 = vld [vmem:[#allocation2 + $0x24] ss:$16 sps:$4 sm:$0xff]   ;;  %v1717_v6 = vld [vmem:[#allocation2 + $0x2c] ss:$16 sps:$4 sm:$0xff]   ;;  %v1719_v7 = vld [vmem:[#allocation2 + $0x20] ss:$16 sps:$4 sm:$0xff]  }
  0x4d   :  { %148 = vmatpush1.bf16.msra.mxu0 %v1713_v3  ;;  %189 = vmatpush1.bf16.msra.mxu1 %v1714_v4  ;;  %v1720_v8 = vld [vmem:[#allocation2 + $0x28] ss:$16 sps:$4 sm:$0xff]   ;;  %v74_v9 = vld [vmem:[%s2171_s0] sm:$0xf]  ;;  %v1723_v11 = vld [vmem:[#allocation4 + $0x4] ss:$12 sps:$4 sm:$0xff]  }
  0x4e   :  { %149 = vmatprep.subr.bf16.mxu0 %v1715_v5  ;;  %190 = vmatprep.subr.bf16.mxu1 %v1717_v6  ;;  %v1721_v10 = vld [vmem:[#allocation4] ss:$12 sps:$4 sm:$0xff]   ;;  %v1726_v12 = vld [vmem:[#allocation4 + $0x1c] ss:$12 sps:$4 sm:$0xff]   ;;  %v1724_v13 = vld [vmem:[#allocation4 + $0x18] ss:$12 sps:$4 sm:$0xff]  }
  0x4f   :  { %v1729_v14 = vld [vmem:[#allocation4 + $0x34] ss:$12 sps:$4 sm:$0xff]   ;;  %v1727_v15 = vld [vmem:[#allocation4 + $0x30] ss:$12 sps:$4 sm:$0xff]   ;;  %v1732_v16 = vld [vmem:[#allocation4 + $0x4c] ss:$12 sps:$4 sm:$0xff]  }
  0x50   :  { %v1730_v17 = vld [vmem:[#allocation4 + $0x48] ss:$12 sps:$4 sm:$0xff]   ;;  %v1735_v18 = vld [vmem:[#allocation4 + $0x64] ss:$12 sps:$4 sm:$0xff]   ;;  %v1733_v19 = vld [vmem:[#allocation4 + $0x60] ss:$12 sps:$4 sm:$0xff]  }
  0x51   :  { %150 = vmatpush1.bf16.msra.mxu0 %v1719_v7  ;;  %191 = vmatpush1.bf16.msra.mxu1 %v1720_v8  ;;  %v1738_v20 = vld [vmem:[#allocation4 + $0x7c] ss:$12 sps:$4 sm:$0xff]   ;;  %v1736_v21 = vld [vmem:[#allocation4 + $0x78] ss:$12 sps:$4 sm:$0xff]   ;;  %v1741_v22 = vld [vmem:[#allocation4 + $0x94] ss:$12 sps:$4 sm:$0xff]  }
  0x52   :  { %958 = vmatprep.subr.bf16.mxu0 %v1723_v11  ;;  %v1739_v23 = vld [vmem:[#allocation4 + $0x90] ss:$12 sps:$4 sm:$0xff]   ;;  %v1744_v24 = vld [vmem:[#allocation4 + $0xac] ss:$12 sps:$4 sm:$0xff]   ;;  %v1742_v25 = vld [vmem:[#allocation4 + $0xa8] ss:$12 sps:$4 sm:$0xff]  }
  0x53   :  { %v2067_v27 = vshrl.u32 %v87_v26, 7  ;;  %v2070_v29 = vld [vmem:[#allocation7] sm:$0xff]  ;;  %v2072_v30 = vld [vmem:[#allocation7 + $0x10] sm:$0xff]  ;;  %v2074_v31 = vld [vmem:[#allocation7 + $0x8] sm:$0xff]  ;;  %vm1985_vm1 = vmmov 0  }
  0x54   :  { %1473 = vmatmul.mubr.msk.bf16.vlgmr.msra.gmra.mrb[0].mxu0 %vm143_vm0, %v74_v9  ;;  %1474 = vmatmul.mubr.msk.bf16.vlgmr.msra.gmra.mrb[0].mxu1 %vm143_vm0, %v74_v9  ;;  %v2079_v35 = vld [vmem:[#allocation7 + $0x18] sm:$0xff]  ;;  %v1747_v59 = vld [vmem:[#allocation4 + $0xc4] ss:$12 sps:$4 sm:$0xff]   ;;  %v1748_v60 = vld [vmem:[#allocation4 + $0xc8] ss:$12 sps:$4 sm:$0xff]  }
  0x55   :  { %959 = vmatpush1.bf16.msra.mxu0 %v1721_v10  ;;  %v89_v28 = vsub.s32 0, %v2067_v27  ;;  %v1745_v61 = vld [vmem:[#allocation4 + $0xc0] ss:$12 sps:$4 sm:$0xff]   ;;  %v1749_v62 = vld [vmem:[#allocation4 + $0x8] ss:$12 sps:$4 sm:$0xff]   ;;  %1595 = vmatprep.subr.bf16.mxu1 %v1748_v60 }
  0x56   :  { %960 = vmatprep.subr.bf16.mxu0 %v1726_v12  ;;  %1596 = vmatpush3.bf16.msra.mxu1 %v1749_v62  ;;  %v1752_v63 = vld [vmem:[#allocation4 + $0xdc] ss:$12 sps:$4 sm:$0xff]   ;;  %v1753_v0 = vld [vmem:[#allocation4 + $0xe0] ss:$12 sps:$4 sm:$0xff]   ;;  %v1750_v1 = vld [vmem:[#allocation4 + $0xd8] ss:$12 sps:$4 sm:$0xff]  }
  0x57   :  { %v90_v32 = vrot.slane %v2070_v29, %v89_v28  ;;  %v98_v33 = vrot.slane %v2072_v30, %v89_v28  ;;  %v94_v34 = vrot.slane %v2074_v31, %v89_v28  ;;  %v102_v43 = vrot.slane %v2079_v35, %v89_v28  ;;  %v1754_v2 = vld [vmem:[#allocation4 + $0x20] ss:$12 sps:$4 sm:$0xff]   ;;  %1597 = vmatprep.subr.bf16.mxu1 %v1753_v0  ;;  %v1758_v4 = vld [vmem:[#allocation4 + $0xf8] ss:$12 sps:$4 sm:$0xff]   ;;  %v1755_v5 = vld [vmem:[#allocation4 + $0xf0] ss:$12 sps:$4 sm:$0xff]  }
  0x58   :  { %v1757_v3 = vld [vmem:[#allocation4 + $0xf4] ss:$12 sps:$4 sm:$0xff]   ;;  %v1759_v6 = vld [vmem:[#allocation4 + $0x38] ss:$12 sps:$4 sm:$0xff]   ;;  %v1763_v8 = vld [vmem:[#allocation4 + $0x110] ss:$12 sps:$4 sm:$0xff]  }
  0x59   :  { %961 = vmatpush1.bf16.msra.mxu0 %v1724_v13  ;;  %v1762_v7 = vld [vmem:[#allocation4 + $0x10c] ss:$12 sps:$4 sm:$0xff]   ;;  %v1760_v9 = vld [vmem:[#allocation4 + $0x108] ss:$12 sps:$4 sm:$0xff]   ;;  %v1764_v10 = vld [vmem:[#allocation4 + $0x50] ss:$12 sps:$4 sm:$0xff]  }
  0x5a   :  { %962 = vmatprep.subr.bf16.mxu0 %v1729_v14  ;;  %1598 = vmatpush3.bf16.msra.mxu1 %v1754_v2  ;;  %v1767_v11 = vld [vmem:[#allocation4 + $0x124] ss:$12 sps:$4 sm:$0xff]   ;;  %v1768_v12 = vld [vmem:[#allocation4 + $0x128] ss:$12 sps:$4 sm:$0xff]   ;;  %v1765_v13 = vld [vmem:[#allocation4 + $0x120] ss:$12 sps:$4 sm:$0xff]  }
  0x5b   :  { %1599 = vmatprep.subr.bf16.mxu1 %v1758_v4  ;;  %v1769_v14 = vld [vmem:[#allocation4 + $0x68] ss:$12 sps:$4 sm:$0xff]   ;;  %v1784_v26 = vld [vmem:[#allocation4 + $0xb0] ss:$12 sps:$4 sm:$0xff]   ;;  %v1785_v4 = vld [vmem:[#allocation4 + $0x180] ss:$12 sps:$4 sm:$0xff]  }
  0x5c   :  { %v1787_v28 = vld [vmem:[#allocation4 + $0x184] ss:$12 sps:$4 sm:$0xff]  }
  0x5d   :  { %963 = vmatpush1.bf16.msra.mxu0 %v1727_v15  ;;  %v1772_v15 = vld [vmem:[#allocation4 + $0x13c] ss:$12 sps:$4 sm:$0xff]  }
  0x5e   :  { %964 = vmatprep.subr.bf16.mxu0 %v1732_v16  ;;  %1600 = vmatpush3.bf16.msra.mxu1 %v1759_v6  ;;  %v1773_v16 = vld [vmem:[#allocation4 + $0x140] ss:$12 sps:$4 sm:$0xff]   ;;  %v1789_v6 = vld [vmem:[#allocation4 + $0x188] ss:$12 sps:$4 sm:$0xff]  }
  0x5f   :  { %1601 = vmatprep.subr.bf16.mxu1 %v1763_v8  ;;  %v1793_v8 = vld [vmem:[#allocation4 + $0x260] ss:$12 sps:$4 sm:$0xff]  }
  0x61   :  { %965 = vmatpush1.bf16.msra.mxu0 %v1730_v17  ;;  %v1770_v17 = vld [vmem:[#allocation4 + $0x138] ss:$12 sps:$4 sm:$0xff]  }
  0x62   :  { %966 = vmatprep.subr.bf16.mxu0 %v1735_v18  ;;  %1602 = vmatpush3.bf16.msra.mxu1 %v1764_v10  ;;  %v1774_v18 = vld [vmem:[#allocation4 + $0x80] ss:$12 sps:$4 sm:$0xff]  }
  0x63   :  { %1603 = vmatprep.subr.bf16.mxu1 %v1768_v12  ;;  %v1794_v10 = vld [vmem:[#allocation4 + $0x1a0] ss:$12 sps:$4 sm:$0xff]   ;;  %v1798_v12 = vld [vmem:[#allocation4 + $0x278] ss:$12 sps:$4 sm:$0xff]  }
  0x65   :  { %967 = vmatpush1.bf16.msra.mxu0 %v1733_v19  ;;  %v1777_v19 = vld [vmem:[#allocation4 + $0x154] ss:$12 sps:$4 sm:$0xff]  }
  0x66   :  { %968 = vmatprep.subr.bf16.mxu0 %v1738_v20  ;;  %1604 = vmatpush3.bf16.msra.mxu1 %v1769_v14  ;;  %v1778_v20 = vld [vmem:[#allocation4 + $0x158] ss:$12 sps:$4 sm:$0xff]  }
  0x67   :  { %1605 = vmatprep.subr.bf16.mxu1 %v1773_v16  ;;  %v1799_v14 = vld [vmem:[#allocation4 + $0x1b8] ss:$12 sps:$4 sm:$0xff]   ;;  %v1803_v16 = vld [vmem:[#allocation4 + $0x290] ss:$12 sps:$4 sm:$0xff]  }
  0x69   :  { %969 = vmatpush1.bf16.msra.mxu0 %v1736_v21  ;;  %v1775_v21 = vld [vmem:[#allocation4 + $0x150] ss:$12 sps:$4 sm:$0xff]  }
  0x6a   :  { %970 = vmatprep.subr.bf16.mxu0 %v1741_v22  ;;  %1606 = vmatpush3.bf16.msra.mxu1 %v1774_v18  ;;  %v1779_v22 = vld [vmem:[#allocation4 + $0x98] ss:$12 sps:$4 sm:$0xff]   ;;  %v1804_v18 = vld [vmem:[#allocation4 + $0x1d0] ss:$12 sps:$4 sm:$0xff]  }
  0x6b   :  { %1607 = vmatprep.subr.bf16.mxu1 %v1778_v20  ;;  %v1808_v20 = vld [vmem:[#allocation4 + $0x2a8] ss:$12 sps:$4 sm:$0xff]  }
  0x6d   :  { %971 = vmatpush1.bf16.msra.mxu0 %v1739_v23  ;;  %v1782_v23 = vld [vmem:[#allocation4 + $0x16c] ss:$12 sps:$4 sm:$0xff]  }
  0x6e   :  { %972 = vmatprep.subr.bf16.mxu0 %v1744_v24  ;;  %v1783_v24 = vld [vmem:[#allocation4 + $0x170] ss:$12 sps:$4 sm:$0xff]   ;;  %1608 = vmatpush3.bf16.msra.mxu1 %v1779_v22  ;;  %v1805_v22 = vld [vmem:[#allocation4 + $0x1e0] ss:$12 sps:$4 sm:$0xff]  }
  0x6f   :  { %1609 = vmatprep.subr.bf16.mxu1 %v1783_v24  ;;  %v1812_v24 = vld [vmem:[#allocation4 + $0x1fc] ss:$12 sps:$4 sm:$0xff]  }
  0x71   :  { %973 = vmatpush1.bf16.msra.mxu0 %v1742_v25  ;;  %v1780_v25 = vld [vmem:[#allocation4 + $0x168] ss:$12 sps:$4 sm:$0xff]  }
  0x72   :  { %974 = vmatprep.subr.bf16.mxu0 %v1747_v59  ;;  %1610 = vmatpush3.bf16.msra.mxu1 %v1784_v26 }
  0x75   :  { %975 = vmatpush1.bf16.msra.mxu0 %v1745_v61 }
  0x76   :  { %976 = vmatprep.subr.bf16.mxu0 %v1752_v63 }
  0x79   :  { %977 = vmatpush1.bf16.msra.mxu0 %v1750_v1 }
  0x7a   :  { %978 = vmatprep.subr.bf16.mxu0 %v1757_v3 }
  0x7d   :  { %979 = vmatpush1.bf16.msra.mxu0 %v1755_v5 }
  0x7e   :  { %980 = vmatprep.subr.bf16.mxu0 %v1762_v7  ;;  %v1792_v7 = vld [vmem:[#allocation4 + $0x19c] ss:$12 sps:$4 sm:$0xff]  }
  0x81   :  { %981 = vmatpush1.bf16.msra.mxu0 %v1760_v9  ;;  %v1790_v9 = vld [vmem:[#allocation4 + $0x198] ss:$12 sps:$4 sm:$0xff]  }
  0x82   :  { %982 = vmatprep.subr.bf16.mxu0 %v1767_v11  ;;  %v1797_v11 = vld [vmem:[#allocation4 + $0x1b4] ss:$12 sps:$4 sm:$0xff]  }
  0x85   :  { %983 = vmatpush1.bf16.msra.mxu0 %v1765_v13  ;;  %v1795_v13 = vld [vmem:[#allocation4 + $0x1b0] ss:$12 sps:$4 sm:$0xff]  }
  0x86   :  { %984 = vmatprep.subr.bf16.mxu0 %v1772_v15  ;;  %v1802_v15 = vld [vmem:[#allocation4 + $0x1cc] ss:$12 sps:$4 sm:$0xff]  }
  0x89   :  { %985 = vmatpush1.bf16.msra.mxu0 %v1770_v17  ;;  %v1800_v17 = vld [vmem:[#allocation4 + $0x1c8] ss:$12 sps:$4 sm:$0xff]  }
  0x8a   :  { %986 = vmatprep.subr.bf16.mxu0 %v1777_v19  ;;  %v1807_v19 = vld [vmem:[#allocation4 + $0x1e4] ss:$12 sps:$4 sm:$0xff]  }
  0x8d   :  { %987 = vmatpush1.bf16.msra.mxu0 %v1775_v21 }
  0x8e   :  { %988 = vmatprep.subr.bf16.mxu0 %v1782_v23  ;;  %v1809_v23 = vld [vmem:[#allocation4 + $0x1e8] ss:$12 sps:$4 sm:$0xff]  }
  0x91   :  { %989 = vmatpush1.bf16.msra.mxu0 %v1780_v25  ;;  %v1813_v25 = vld [vmem:[#allocation4 + $0x2c0] ss:$12 sps:$4 sm:$0xff]  }
  0x92   :  { %999 = vmatprep.subr.bf16.mxu0 %v1787_v28 }
 0x127   :  { %v181_v36 = vpop.f32.mrb[0].mxu0  ;;  %v222_v37 = vpop.f32.mrb[0].mxu1 }
 0x128   :  { %v2081_v38 = vadd.f32 %v181_v36, %v90_v32  ;;  %v2083_v39 = vadd.f32 %v222_v37, %v98_v33  ;;  %v183_v40 = vpop.f32.mrb[1].mxu0  ;;  %v224_v41 = vpop.f32.mrb[1].mxu1  ;;  %v1788_v32 = vld [vmem:[#allocation4 + $0x248] ss:$12 sps:$4 sm:$0xff]  }
 0x129   :  { %v2085_v42 = vadd.f32 %v183_v40, %v94_v34  ;;  %v185_v44 = vpop.f32.mrb[2].mxu0  ;;  %v226_v45 = vpop.f32.mrb[2].mxu1  ;;  %v2096_v52 = vadd.f32 %v224_v41, %v102_v43  ;;  %1617 = vmatprep.subr.bf16.mxu1 %v1788_v32  ;;  %v1810_v32 = vld [vmem:[#allocation4 + $0x1f8] ss:$12 sps:$4 sm:$0xff]  }
 0x12a   :  { %v235_v46 = vmul.f32 %v2081_v38, %v2081_v38  ;;  %v186_v47 = vpop.f32.mrb[3].mxu0  ;;  %v227_v48 = vpop.f32.mrb[3].mxu1  ;;  %v237_v49 = vmul.f32 %v2083_v39, %v2083_v39  ;;  %v2107_v45 = vsub.s32 1, %v2067_v27 }
 0x12b   :  { %v236_v50 = vmul.f32 %v2085_v42, %v2085_v42  ;;  %v229_v51 = vadd.f32 %v2085_v42, %v2081_v38  ;;  %v238_v57 = vmul.f32 %v2096_v52, %v2096_v52 }
 0x12c   :  { %v273_v47 = vrot.slane %v2079_v35, %v2107_v45  ;;  %v265_v48 = vrot.slane %v2074_v31, %v2107_v45  ;;  %v269_v28 = vrot.slane %v2072_v30, %v2107_v45 }
 0x12d   :  { %v230_v53 = vadd.f32 %v229_v51, %v2083_v39  ;;  %v239_v54 = vadd.f32 %v236_v50, %v235_v46  ;;  %v2110_v46 = vsub.s32 2, %v2067_v27  ;;  %v261_v51 = vrot.slane %v2070_v29, %v2107_v45 }
 0x12f   :  { %v231_v55 = vadd.f32 %v230_v53, %v2096_v52  ;;  %v240_v56 = vadd.f32 %v239_v54, %v237_v49 }
 0x131   :  { %232 = vadd.xlane.f32.xlu0 %v231_v55  ;;  %v241_v58 = vadd.f32 %v240_v56, %v238_v57  ;;  %v285_v55 = vrot.slane %v2074_v31, %v2110_v46  ;;  %v281_v56 = vrot.slane %v2070_v29, %v2110_v46 }
 0x135   :  { %242 = vadd.xlane.f32.xlu0 %v241_v58 }
 0x1be   :  { %v233_v33 = vpop.xlane.xlu0 %232 }
 0x1bf   :  { %v2102_v34 = vmul.f32 0.0025, %v233_v33  ;;  %v1814_v33 = vld [vmem:[#allocation4 + $0x200] ss:$12 sps:$4 sm:$0xff]  }
 0x1c1   :  { %v245_v37 = vmul.f32 %v2102_v34, %v2102_v34  ;;  %v248_v49 = vsub.f32 %v2081_v38, %v2102_v34  ;;  %v249_v50 = vsub.f32 %v2085_v42, %v2102_v34  ;;  %v251_v53 = vsub.f32 %v2096_v52, %v2102_v34 }
 0x1c2   :  { %v243_v36 = vpop.xlane.xlu0 %242  ;;  %v293_v38 = vrot.slane %v2079_v35, %v2110_v46  ;;  %v250_v21 = vsub.f32 %v2083_v39, %v2102_v34  ;;  %v1818_v39 = vld [vmem:[#allocation4 + $0x2d8] ss:$12 sps:$4 sm:$0xff]  }
 0x1c3   :  { %v244_v40 = vmul.f32 0.0025, %v243_v36  ;;  %v1817_v36 = vld [vmem:[#allocation4 + $0x214] ss:$12 sps:$4 sm:$0xff]  }
 0x1c5   :  { %v246_v41 = vsub.f32 %v244_v40, %v245_v37  ;;  %v289_v37 = vrot.slane %v2072_v30, %v2110_v46  ;;  %v1815_v40 = vld [vmem:[#allocation4 + $0x210] ss:$12 sps:$4 sm:$0xff]   ;;  %v1825_v46 = vld [vmem:[#allocation4 + $0x240] ss:$12 sps:$4 sm:$0xff]  }
 0x1c7   :  { %v247_v43 = vmax.f32 %v246_v41, 0.0  ;;  %v1819_v41 = vld [vmem:[#allocation4 + $0x218] ss:$12 sps:$4 sm:$0xff]  }
 0x1c9   :  { %v252_v44 = vadd.f32 1e-05, %v247_v43  ;;  %v1822_v43 = vld [vmem:[#allocation4 + $0x22c] ss:$12 sps:$4 sm:$0xff]  }
 0x1cb   :  { %1873 = vrsqrt.f32 %v252_v44  ;;  %v1823_v44 = vld [vmem:[#allocation4 + $0x2f0] ss:$12 sps:$4 sm:$0xff]  }
 0x1d5   :  { %v1874_v54 = vpop.eup %1873 }
 0x1d6   :  { %v255_v57 = vmul.f32 %v1874_v54, %v249_v50  ;;  %v254_v58 = vmul.f32 %v1874_v54, %v248_v49  ;;  %v257_v59 = vmul.f32 %v1874_v54, %v251_v53  ;;  %v256_v26 = vmul.f32 %v1874_v54, %v250_v21  ;;  %v1827_v49 = vld [vmem:[#allocation4 + $0x244] ss:$12 sps:$4 sm:$0xff]   ;;  %v1830_v53 = vld [vmem:[#allocation4 + $0x25c] ss:$12 sps:$4 sm:$0xff]  }
 0x1d7   :  { %v1828_v54 = vld [vmem:[#allocation4 + $0x258] ss:$12 sps:$4 sm:$0xff]  }
 0x1d8   :  { %v275_v42 = vmul.f32 %v265_v48, %v255_v57  ;;  %v274_v60 = vmul.f32 %v261_v51, %v254_v58  ;;  %v277_v61 = vmul.f32 %v273_v47, %v257_v59  ;;  %v276_v34 = vmul.f32 %v269_v28, %v256_v26  ;;  %v1820_v47 = vld [vmem:[#allocation4 + $0x228] ss:$12 sps:$4 sm:$0xff]   ;;  %v1824_v48 = vld [vmem:[#allocation4 + $0x230] ss:$12 sps:$4 sm:$0xff]   ;;  %v1836_v57 = vld [vmem:[#allocation4 + $0x28c] ss:$12 sps:$4 sm:$0xff]  }
 0x1d9   :  { %v1834_v58 = vld [vmem:[#allocation4 + $0x288] ss:$12 sps:$4 sm:$0xff]   ;;  %v1839_v59 = vld [vmem:[#allocation4 + $0x2a4] ss:$12 sps:$4 sm:$0xff]  }
 0x1da   :  { %v295_v62 = vadd.f32 %v285_v55, %v275_v42  ;;  %v294_v63 = vadd.f32 %v281_v56, %v274_v60  ;;  %v297_v0 = vadd.f32 %v293_v38, %v277_v61  ;;  %v296_v45 = vadd.f32 %v289_v37, %v276_v34  ;;  %v1833_v55 = vld [vmem:[#allocation4 + $0x274] ss:$12 sps:$4 sm:$0xff]   ;;  %v1831_v56 = vld [vmem:[#allocation4 + $0x270] ss:$12 sps:$4 sm:$0xff]   ;;  %v1840_v60 = vld [vmem:[#allocation4 + $0x2b8] ss:$12 sps:$4 sm:$0xff]  }
 0x1db   :  { %v1837_v38 = vld [vmem:[#allocation4 + $0x2a0] ss:$12 sps:$4 sm:$0xff]   ;;  %v1842_v42 = vld [vmem:[#allocation4 + $0x2bc] ss:$12 sps:$4 sm:$0xff]   ;;  %v1853_v34 = vld [vmem:[#allocation6 + $0x50] sm:$0xff]  }
 0x1dc   :  { %v299_v52 = vmax.f32 %v295_v62, 0.0  ;;  %v298_v1 = vmax.f32 %v294_v63, 0.0  ;;  %v301_v2 = vmax.f32 %v297_v0, 0.0  ;;  %v300_v50 = vmax.f32 %v296_v45, 0.0  ;;  %v1845_v61 = vld [vmem:[#allocation4 + $0x2d4] ss:$12 sps:$4 sm:$0xff]  }
 0x1dd   :  { %v1843_v62 = vld [vmem:[#allocation4 + $0x2d0] ss:$12 sps:$4 sm:$0xff]   ;;  %v1848_v63 = vld [vmem:[#allocation4 + $0x2ec] ss:$12 sps:$4 sm:$0xff]   ;;  %v1846_v0 = vld [vmem:[#allocation4 + $0x2e8] ss:$12 sps:$4 sm:$0xff]  }
 0x1de   :  { %v303_v3 = vpack.c.bf16 %v299_v52, %v299_v52  ;;  %v302_v5 = vpack.c.bf16 %v298_v1, %v298_v1  ;;  %v305_v35 = vpack.c.bf16 %v301_v2, %v301_v2  ;;  %v304_v51 = vpack.c.bf16 %v300_v50, %v300_v50  ;;  %v1854_v37 = vld [vmem:[#allocation6 + $0x10] sm:$0xff]   ;;  %v1859_v45 = vld [vmem:[#allocation6 + $0x68] sm:$0xff]   ;;  %v1863_v50 = vld [vmem:[#allocation6 + $0x78] sm:$0xff]  }
 0x1e0   :  { %990 = vmatprep.mubr.bf16.mxu0 %v303_v3  ;;  %1072 = vmatprep.mubr.bf16.mxu1 %v303_v3 }
 0x1e1   :  { %991 = vmatmul.mubr.bf16.vlgmr.msra.gmra.mrb[4].mxu0 %v302_v5  ;;  %1073 = vmatmul.mubr.bf16.vlgmr.msra.gmra.mrb[4].mxu1 %v302_v5  ;;  %v436_v5 = vsub.s32 3, %v2067_v27 }
 0x1e2   :  { %1000 = vmatpush1.bf16.msra.mxu0 %v1785_v4  ;;  %1618 = vmatpush3.bf16.msra.mxu1 %v1789_v6 }
 0x1e3   :  { %1031 = vmatprep.mubr.bf16.mxu0 %v305_v35  ;;  %1112 = vmatprep.mubr.bf16.mxu1 %v305_v35  ;;  %v445_v6 = vrot.slane %v2072_v30, %v436_v5 }
 0x1e4   :  { %1001 = vmatprep.subr.bf16.mxu0 %v1792_v7  ;;  %1619 = vmatprep.subr.bf16.mxu1 %v1793_v8 }
 0x1e6   :  { %1002 = vmatpush1.bf16.msra.mxu0 %v1790_v9  ;;  %1620 = vmatpush3.bf16.msra.mxu1 %v1794_v10 }
 0x1e7   :  { %1003 = vmatprep.subr.bf16.mxu0 %v1797_v11  ;;  %1621 = vmatprep.subr.bf16.mxu1 %v1798_v12 }
 0x1ea   :  { %1004 = vmatpush1.bf16.msra.mxu0 %v1795_v13  ;;  %1622 = vmatpush3.bf16.msra.mxu1 %v1799_v14  ;;  %v437_v13 = vrot.slane %v2070_v29, %v436_v5  ;;  %v441_v14 = vrot.slane %v2074_v31, %v436_v5 }
 0x1eb   :  { %1005 = vmatprep.subr.bf16.mxu0 %v1802_v15  ;;  %1623 = vmatprep.subr.bf16.mxu1 %v1803_v16 }
 0x1ee   :  { %1006 = vmatpush1.bf16.msra.mxu0 %v1800_v17  ;;  %1624 = vmatpush3.bf16.msra.mxu1 %v1804_v18 }
 0x1ef   :  { %1007 = vmatprep.subr.bf16.mxu0 %v1807_v19  ;;  %1625 = vmatprep.subr.bf16.mxu1 %v1808_v20 }
 0x1f2   :  { %1008 = vmatpush1.bf16.msra.mxu0 %v1805_v22  ;;  %1626 = vmatpush3.bf16.msra.mxu1 %v1809_v23 }
 0x1f3   :  { %1009 = vmatprep.subr.bf16.mxu0 %v1812_v24  ;;  %1627 = vmatprep.subr.bf16.mxu1 %v1813_v25 }
 0x1f6   :  { %1010 = vmatpush1.bf16.msra.mxu0 %v1810_v32  ;;  %1628 = vmatpush3.bf16.msra.mxu1 %v1814_v33  ;;  %v1849_v32 = vld [vmem:[#allocation6 + $0x40] sm:$0xff]  }
 0x1f7   :  { %1011 = vmatprep.subr.bf16.mxu0 %v1817_v36  ;;  %1629 = vmatprep.subr.bf16.mxu1 %v1818_v39  ;;  %v1850_v33 = vld [vmem:[#allocation6] sm:$0xff]   ;;  %v1851_v36 = vld [vmem:[#allocation6 + $0x48] sm:$0xff]  }
 0x1f8   :  { %v1852_v39 = vld [vmem:[#allocation6 + $0x8] sm:$0xff]  }
 0x1fa   :  { %1012 = vmatpush1.bf16.msra.mxu0 %v1815_v40  ;;  %1630 = vmatpush3.bf16.msra.mxu1 %v1819_v41  ;;  %v1855_v40 = vld [vmem:[#allocation6 + $0x58] sm:$0xff]  }
 0x1fb   :  { %1013 = vmatprep.subr.bf16.mxu0 %v1822_v43  ;;  %1631 = vmatprep.subr.bf16.mxu1 %v1823_v44  ;;  %v1856_v41 = vld [vmem:[#allocation6 + $0x18] sm:$0xff]   ;;  %v1857_v43 = vld [vmem:[#allocation6 + $0x60] sm:$0xff]  }
 0x1fc   :  { %v1858_v44 = vld [vmem:[#allocation6 + $0x20] sm:$0xff]  }
 0x1fe   :  { %1014 = vmatpush1.bf16.msra.mxu0 %v1820_v47  ;;  %1632 = vmatpush3.bf16.msra.mxu1 %v1824_v48  ;;  %v1860_v47 = vld [vmem:[#allocation6 + $0x28] sm:$0xff]   ;;  %v1861_v48 = vld [vmem:[#allocation6 + $0x70] sm:$0xff]  }
 0x1ff   :  { %1015 = vmatprep.subr.bf16.mxu0 %v1827_v49  ;;  %1639 = vmatprep.subr.bf16.mxu1 %v1849_v32  ;;  %v1862_v49 = vld [vmem:[#allocation6 + $0x30] sm:$0xff]  }
 0x201   :  { %1113 = vmatmul.mubr.bf16.vlgmr.msra.gmra.mrb[8].mxu1 %v304_v51 }
 0x202   :  { %1016 = vmatpush1.bf16.msra.mxu0 %v1825_v46  ;;  %1640 = vmatpush3.bf16.msra.mxu1 %v1850_v33  ;;  %v1864_v46 = vld [vmem:[#allocation6 + $0x38] sm:$0xff]  }
 0x203   :  { %1017 = vmatprep.subr.bf16.mxu0 %v1830_v53  ;;  %1641 = vmatprep.subr.bf16.mxu1 %v1851_v36 }
 0x206   :  { %1018 = vmatpush1.bf16.msra.mxu0 %v1828_v54  ;;  %1642 = vmatpush3.bf16.msra.mxu1 %v1852_v39 }
 0x207   :  { %1019 = vmatprep.subr.bf16.mxu0 %v1833_v55  ;;  %1643 = vmatprep.subr.bf16.mxu1 %v1853_v34  ;;  %v1230_v34 = vsub.s32 6, %v2067_v27 }
 0x20a   :  { %1020 = vmatpush1.bf16.msra.mxu0 %v1831_v56  ;;  %1644 = vmatpush3.bf16.msra.mxu1 %v1854_v37 }
 0x20b   :  { %1021 = vmatprep.subr.bf16.mxu0 %v1836_v57  ;;  %1645 = vmatprep.subr.bf16.mxu1 %v1855_v40 }
 0x20e   :  { %1022 = vmatpush1.bf16.msra.mxu0 %v1834_v58  ;;  %1646 = vmatpush3.bf16.msra.mxu1 %v1856_v41 }
 0x20f   :  { %1023 = vmatprep.subr.bf16.mxu0 %v1839_v59  ;;  %1647 = vmatprep.subr.bf16.mxu1 %v1857_v43 }
 0x212   :  { %1024 = vmatpush1.bf16.msra.mxu0 %v1837_v38  ;;  %1648 = vmatpush3.bf16.msra.mxu1 %v1858_v44 }
 0x213   :  { %1025 = vmatprep.subr.bf16.mxu0 %v1842_v42  ;;  %1649 = vmatprep.subr.bf16.mxu1 %v1859_v45  ;;  %v1146_v42 = vsub.s32 4, %v2067_v27 }
 0x216   :  { %1026 = vmatpush1.bf16.msra.mxu0 %v1840_v60  ;;  %1650 = vmatpush3.bf16.msra.mxu1 %v1860_v47  ;;  %v1161_v60 = vsub.s32 5, %v2067_v27 }
 0x217   :  { %1027 = vmatprep.subr.bf16.mxu0 %v1845_v61  ;;  %1651 = vmatprep.subr.bf16.mxu1 %v1861_v48 }
 0x21a   :  { %1028 = vmatpush1.bf16.msra.mxu0 %v1843_v62  ;;  %1652 = vmatpush3.bf16.msra.mxu1 %v1862_v49 }
 0x21b   :  { %1029 = vmatprep.subr.bf16.mxu0 %v1848_v63  ;;  %1653 = vmatprep.subr.bf16.mxu1 %v1863_v50  ;;  %v1151_v63 = vrot.slane %v2074_v31, %v1146_v42 }
 0x21e   :  { %1030 = vmatpush1.bf16.msra.mxu0 %v1846_v0  ;;  %1654 = vmatpush3.bf16.msra.mxu1 %v1864_v46  ;;  %v1147_v0 = vrot.slane %v2070_v29, %v1146_v42 }
 0x221   :  { %1032 = vmatmul.mubr.bf16.vlgmr.msra.gmra.mrb[4].mxu0 %v304_v51  ;;  %v1984_v51 = vmov 0.0  }
 0x222   :  { %1670 = vmatprep.subr.bf16.mxu1 %v1984_v51 }
 0x2b4   :  { %v1611_v52 = vpop.f32.mrb[4].mxu1 }
 0x2b5   :  { %v1612_v1 = vpop.f32.mrb[5].mxu1 }
 0x2b6   :  { %v1613_v2 = vadd.f32 %v1612_v1, %v1611_v52  ;;  %v1614_v3 = vpop.f32.mrb[6].mxu1 }
 0x2b7   :  { %v1615_v4 = vpop.f32.mrb[7].mxu1 }
 0x2b8   :  { %v1075_v35 = vadd.f32 %v1613_v2, %v445_v6  ;;  %v1166_v2 = vrot.slane %v2074_v31, %v1161_v60  ;;  %v1162_v4 = vrot.slane %v2070_v29, %v1161_v60  ;;  %v1867_v31 = vld [vmem:[#allocation6 + $0x90] sm:$0xff]  }
 0x2d4   :  { %v1633_v7 = vpop.f32.mrb[8].mxu1 }
 0x2d5   :  { %v1634_v8 = vpop.f32.mrb[9].mxu1 }
 0x2d6   :  { %v1635_v9 = vadd.f32 %v1634_v8, %v1633_v7  ;;  %v1636_v10 = vpop.f32.mrb[10].mxu1 }
 0x2d7   :  { %v1637_v11 = vpop.f32.mrb[11].mxu1 }
 0x2d8   :  { %v2138_v12 = vadd.f32 %v1635_v9, %v1075_v35 }
 0x2da   :  { %v1127_v26 = vmul.f32 %v2138_v12, %v2138_v12 }
 0x2f4   :  { %v1033_v15 = vpop.f32.mrb[4].mxu0 }
 0x2f5   :  { %v2142_v16 = vadd.f32 %v1033_v15, %v437_v13  ;;  %v1035_v17 = vpop.f32.mrb[5].mxu0  ;;  %v1865_v13 = vld [vmem:[#allocation6 + $0x80] sm:$0xff]   ;;  %v1868_v15 = vld [vmem:[#allocation6 + $0x98] sm:$0xff]  }
 0x2f6   :  { %v2144_v18 = vadd.f32 %v1035_v17, %v441_v14  ;;  %v1037_v19 = vpop.f32.mrb[6].mxu0  ;;  %v1866_v14 = vld [vmem:[#allocation6 + $0x88] sm:$0xff]   ;;  %v1869_v17 = vld [vmem:[#allocation6 + $0xa0] sm:$0xff]  }
 0x2f7   :  { %v1125_v20 = vmul.f32 %v2142_v16, %v2142_v16  ;;  %v1038_v21 = vpop.f32.mrb[7].mxu0  ;;  %v1155_v19 = vrot.slane %v2072_v30, %v1146_v42 }
 0x2f8   :  { %v1126_v22 = vmul.f32 %v2144_v18, %v2144_v18  ;;  %v1120_v23 = vadd.f32 %v2144_v18, %v2142_v16 }
 0x2fa   :  { %v1121_v24 = vadd.f32 %v1120_v23, %v2138_v12  ;;  %v1128_v25 = vadd.f32 %v1126_v22, %v1125_v20  ;;  %v1870_v20 = vld [vmem:[#allocation6 + $0xa8] sm:$0xff]   ;;  %v1170_v22 = vrot.slane %v2072_v30, %v1161_v60  ;;  %v1871_v23 = vld [vmem:[#allocation6 + $0xb0] sm:$0xff]   ;;  %v1231_v30 = vrot.slane %v2070_v29, %v1230_v34 }
 0x2fc   :  { %1122 = vadd.xlane.f32.xlu1 %v1121_v24  ;;  %v1129_v28 = vadd.f32 %v1128_v25, %v1127_v26  ;;  %v1872_v25 = vld [vmem:[#allocation6 + $0xb8] sm:$0xff]  }
 0x300   :  { %1130 = vadd.xlane.f32.xlu1 %v1129_v28 }
 0x389   :  { %v1123_v53 = vpop.xlane.xlu1 %1122 }
 0x38a   :  { %v1124_v54 = vmul.f32 0.0033333334, %v1123_v53 }
 0x38c   :  { %v1133_v56 = vmul.f32 %v1124_v54, %v1124_v54  ;;  %v1136_v61 = vsub.f32 %v2142_v16, %v1124_v54  ;;  %v1137_v62 = vsub.f32 %v2144_v18, %v1124_v54  ;;  %v1138_v16 = vsub.f32 %v2138_v12, %v1124_v54 }
 0x38d   :  { %v1131_v55 = vpop.xlane.xlu1 %1130 }
 0x38e   :  { %v1132_v57 = vmul.f32 0.0033333334, %v1131_v55 }
 0x390   :  { %v1134_v58 = vsub.f32 %v1132_v57, %v1133_v56 }
 0x392   :  { %v1135_v59 = vmax.f32 %v1134_v58, 0.0 }
 0x394   :  { %v1139_v38 = vadd.f32 1e-05, %v1135_v59 }
 0x396   :  { %1875 = vrsqrt.f32 %v1139_v38 }
 0x3a0   :  { %v1876_v52 = vpop.eup %1875 }
 0x3a1   :  { %v1142_v1 = vmul.f32 %v1876_v52, %v1137_v62  ;;  %v1141_v3 = vmul.f32 %v1876_v52, %v1136_v61  ;;  %v1143_v18 = vmul.f32 %v1876_v52, %v1138_v16 }
 0x3a3   :  { %v1157_v5 = vmul.f32 %v1151_v63, %v1142_v1  ;;  %v1156_v6 = vmul.f32 %v1147_v0, %v1141_v3  ;;  %v1158_v21 = vmul.f32 %v1155_v19, %v1143_v18 }
 0x3a5   :  { %v1172_v7 = vadd.f32 %v1166_v2, %v1157_v5  ;;  %v1171_v8 = vadd.f32 %v1162_v4, %v1156_v6  ;;  %v1173_v24 = vadd.f32 %v1170_v22, %v1158_v21 }
 0x3a7   :  { %v1175_v35 = vmax.f32 %v1172_v7, 0.0  ;;  %v1174_v9 = vmax.f32 %v1171_v8, 0.0  ;;  %v1176_v12 = vmax.f32 %v1173_v24, 0.0 }
 0x3a9   :  { %v1178_v10 = vpack.c.bf16 %v1175_v35, %v1175_v35  ;;  %v1177_v11 = vpack.c.bf16 %v1174_v9, %v1174_v9  ;;  %v1179_v26 = vpack.c.bf16 %v1176_v12, %v1176_v12 }
 0x3ab   :  { %1408 = vmatprep.mubr.bf16.mxu1 %v1178_v10 }
 0x3ac   :  { %1409 = vmatmul.mubr.bf16.vlgmr.msra.gmra.mrb[12].mxu1 %v1177_v11 }
 0x3ad   :  { %1671 = vmatpush3.bf16.msra.mxu1 %v1865_v13  ;;  %1686 = vmatprep.mubr.msk.bf16.mxu1 %vm1985_vm1, %v1984_v51 }
 0x3ae   :  { %1672 = vmatprep.subr.bf16.mxu1 %v1984_v51 }
 0x3b1   :  { %1673 = vmatpush3.bf16.msra.mxu1 %v1866_v14 }
 0x3b2   :  { %1674 = vmatprep.subr.bf16.mxu1 %v1984_v51 }
 0x3b5   :  { %1675 = vmatpush3.bf16.msra.mxu1 %v1867_v31 }
 0x3b6   :  { %1676 = vmatprep.subr.bf16.mxu1 %v1984_v51 }
 0x3b9   :  { %1677 = vmatpush3.bf16.msra.mxu1 %v1868_v15 }
 0x3ba   :  { %1678 = vmatprep.subr.bf16.mxu1 %v1984_v51 }
 0x3bd   :  { %1679 = vmatpush3.bf16.msra.mxu1 %v1869_v17 }
 0x3be   :  { %1680 = vmatprep.subr.bf16.mxu1 %v1984_v51 }
 0x3c1   :  { %1681 = vmatpush3.bf16.msra.mxu1 %v1870_v20 }
 0x3c2   :  { %1682 = vmatprep.subr.bf16.mxu1 %v1984_v51 }
 0x3c5   :  { %1683 = vmatpush3.bf16.msra.mxu1 %v1871_v23 }
 0x3c6   :  { %1684 = vmatprep.subr.bf16.mxu1 %v1984_v51 }
 0x3c9   :  { %1685 = vmatpush3.bf16.msra.mxu1 %v1872_v25 }
 0x3cc   :  { %1687 = vmatmul.mubr.bf16.vlgmr.msra.gmra.mrb[16].mxu1 %v1179_v26 }
 0x47f   :  { %v1655_v28 = vpop.f32.mrb[12].mxu1 }
 0x480   :  { %v1656_v32 = vpop.f32.mrb[13].mxu1 }
 0x481   :  { %v1657_v33 = vadd.f32 %v1656_v32, %v1655_v28  ;;  %v1658_v36 = vpop.f32.mrb[14].mxu1 }
 0x482   :  { %v1659_v39 = vpop.f32.mrb[15].mxu1 }
 0x483   :  { %v1411_v37 = vadd.f32 %v1657_v33, %v1231_v30 }
 0x49f   :  { %v1450_v40 = vpop.f32.mrb[16].mxu1 }
 0x4a0   :  { %v1451_v41 = vadd.f32 %v1450_v40, %v1411_v37  ;;  %v1688_v43 = vpop.f32.mrb[17].mxu1 }
 0x4a1   :  { %v1453_v44 = vpop.f32.mrb[18].mxu1 }
 0x4a2   :  { %1877 = vtanh.f32 %v1451_v41  ;;  %v1689_v45 = vpop.f32.mrb[19].mxu1 }
 0x4ac   :  { %v1878_v47 = vpop.eup %1877 }
 0x4ad   :  { %1457 = vst [vmem:[%s2176_s5] sm:$0xff] %v1878_v47 }
 0x4ae   :  { %1462 = vsyncpa [#allocation3], 1 }
 0x4af   :  { %1463 = vsyncpa [#allocation5], 1 }
 0x4b0   :  { %1464 = vsyncpa [#allocation8], 1 }

</bundles_post_ra>
